<compile_context>
chip_gen: v6e
topology: v6e:2x2x1
jax: 0.10.0
libtpu: 0.0.40
codegen_flags: <defaults>
</compile_context>

<pallas_src>
import functools

import jax
import jax.numpy as jnp
from jax.experimental import pallas as pl
from jax.experimental.pallas import tpu as pltpu

LOG_STD_MAX = 2.0
LOG_STD_MIN = -20.0
EPS = 1e-8


def _round_up(x, m):
    return ((x + m - 1) // m) * m


def _pad2(a, rows, cols):
    return jnp.pad(a, ((0, rows - a.shape[0]), (0, cols - a.shape[1])))


def _policy_kernel(obs_ref, obs_b_ref, inv_obs_s_ref,
                   w1_ref, b1_ref, w2_ref, b2_ref,
                   wh_ref, bh_ref,
                   noise_ref, act_s_ref, act_b_ref,
                   out_ref, *, act_dim):
    tb, act_p = noise_ref.shape

    # --- obs normalization: (obs - obs_bias) * 1/(obs_scale + eps) ---
    x = (obs_ref[...] - obs_b_ref[...]) * inv_obs_s_ref[...]

    # --- MLP backbone (MLPNet with arch = (H1, H2), ReLU), padded to 128 lanes ---
    h1 = jnp.maximum(
        jnp.dot(x, w1_ref[...], preferred_element_type=jnp.float32) + b1_ref[...], 0.0)
    h2 = jnp.maximum(
        jnp.dot(h1, w2_ref[...], preferred_element_type=jnp.float32) + b2_ref[...], 0.0)

    # --- fused mean / log_std head: single [H2, 2*ACT_P] matmul, lane-aligned split ---
    head = jnp.dot(h2, wh_ref[...], preferred_element_type=jnp.float32) + bh_ref[...]
    mean = head[:, :act_p]
    log_std = jnp.clip(head[:, act_p:], LOG_STD_MIN, LOG_STD_MAX)
    std = jnp.exp(log_std)

    # --- reparameterized sample: rsample() == mean + std * N(0,1) ---
    z = noise_ref[...]
    sample = mean + std * z
    prob = jnp.tanh(sample)

    act_s = act_s_ref[...]
    # Normal(mean, std).log_prob(sample); (sample - mean) / std == z
    log_prob = (-0.5 * z * z - log_std - 0.5 * jnp.log(2.0 * jnp.pi)
                - jnp.log(act_s * (1.0 - prob * prob) + EPS))

    # Mask the padded action lanes out of the reduction.
    lane = jax.lax.broadcasted_iota(jnp.int32, (tb, act_p), 1)
    log_pi = jnp.sum(jnp.where(lane < act_dim, log_prob, 0.0), axis=1, keepdims=True)

    pi = prob * act_s + act_b_ref[...]

    # Lane-dense packed output: pi in lanes [0, act_dim), log_pi in lane act_dim.
    out_ref[...] = jnp.where(lane == act_dim, log_pi, pi)


def stochastic_policy_forward(obs, params, noise):
    """Runs the fused policy forward pass in a single tiled Pallas kernel."""
    B, obs_dim = obs.shape
    act_dim = params["act_bias"].shape[-1]
    h1_dim = params["w1"].shape[1]
    h2_dim = params["w2"].shape[1]

    OBS_P = _round_up(obs_dim, 128)
    H1_P = _round_up(h1_dim, 128)
    H2_P = _round_up(h2_dim, 128)
    ACT_P = _round_up(act_dim + 1, 128)          # +1 lane reserved for log_pi packing

    TB = min(512, _round_up(B, 8))               # batch tile (rows); big tiles pipeline well
    B_P = _round_up(B, TB)

    # --- pad batch-major inputs ---
    obs_p = _pad2(obs, B_P, OBS_P)
    noise_p = _pad2(noise, B_P, ACT_P)

    # --- pad / fuse parameters (all tiny; padding cost is negligible) ---
    obs_b = _pad2(params["obs_bias"], 1, OBS_P)
    inv_obs_s = _pad2(1.0 / (params["obs_scale"] + EPS), 1, OBS_P)
    w1 = _pad2(params["w1"], OBS_P, H1_P)
    b1 = _pad2(params["b1"], 1, H1_P)
    w2 = _pad2(params["w2"], H1_P, H2_P)
    b2 = _pad2(params["b2"], 1, H2_P)
    # fused head weight: mean in cols [0, ACT_P), log_std in cols [ACT_P, 2*ACT_P)
    wh = jnp.concatenate([_pad2(params["w_mean"], H2_P, ACT_P),
                          _pad2(params["w_logstd"], H2_P, ACT_P)], axis=1)
    bh = jnp.concatenate([_pad2(params["b_mean"], 1, ACT_P),
                          _pad2(params["b_logstd"], 1, ACT_P)], axis=1)
    act_s = _pad2(params["act_scale"], 1, ACT_P)
    act_b = _pad2(params["act_bias"], 1, ACT_P)

    def _const(arr):  # grid-invariant parameter: DMA'd to VMEM once
        return pl.BlockSpec(arr.shape, lambda i: (0, 0))

    in_specs = [
        pl.BlockSpec((TB, OBS_P), lambda i: (i, 0)),   # obs (batch-tiled)
        _const(obs_b), _const(inv_obs_s),
        _const(w1), _const(b1), _const(w2), _const(b2),
        _const(wh), _const(bh),
        pl.BlockSpec((TB, ACT_P), lambda i: (i, 0)),   # noise (batch-tiled)
        _const(act_s), _const(act_b),
    ]

    kernel = functools.partial(_policy_kernel, act_dim=act_dim)

    out = pl.pallas_call(
        kernel,
        out_shape=jax.ShapeDtypeStruct((B_P, ACT_P), jnp.float32),
        grid=(B_P // TB,),
        in_specs=in_specs,
        out_specs=pl.BlockSpec((TB, ACT_P), lambda i: (i, 0)),
        compiler_params=pltpu.CompilerParams(
            dimension_semantics=("parallel",),       # megacore-split the batch on v7x
            vmem_limit_bytes=32 * 1024 * 1024,       # fits v5e/v6e/v7x scoped VMEM
        ),
    )(obs_p, obs_b, inv_obs_s, w1, b1, w2, b2, wh, bh, noise_p, act_s, act_b)

    # Unpack the lane-dense slab in the wrapper (layout plumbing, no extra compute).
    pi = out[:B, :act_dim]
    log_pi = out[:B, act_dim:act_dim + 1]
    return pi, log_pi


def _xavier_uniform(key, fan_in, fan_out):
    limit = jnp.sqrt(6.0 / (fan_in + fan_out))
    return jax.random.uniform(key, (fan_in, fan_out), jnp.float32, -limit, limit)


def make_params(key, obs_dim, hidden, act_dim, act_up_lim, act_low_lim):
    ks = jax.random.split(key, 8)
    h1, h2 = hidden
    params = {
        # MLPNet hidden layers
        "w1": _xavier_uniform(ks[0], obs_dim, h1),
        "b1": jax.random.uniform(ks[1], (1, h1), jnp.float32, 0.0, 1.0),
        "w2": _xavier_uniform(ks[2], h1, h2),
        "b2": jax.random.uniform(ks[3], (1, h2), jnp.float32, 0.0, 1.0),
        # mean / log_std heads
        "w_mean": _xavier_uniform(ks[4], h2, act_dim),
        "b_mean": jax.random.uniform(ks[5], (1, act_dim), jnp.float32, 0.0, 1.0),
        "w_logstd": _xavier_uniform(ks[6], h2, act_dim),
        "b_logstd": jax.random.uniform(ks[7], (1, act_dim), jnp.float32, 0.0, 1.0),
        # obs / action affine transforms
        "obs_bias": jnp.zeros((1, obs_dim), jnp.float32),
        "obs_scale": jnp.ones((1, obs_dim), jnp.float32),
        "act_scale": ((act_up_lim - act_low_lim) / 2.0).reshape(1, act_dim),
        "act_bias": ((act_up_lim + act_low_lim) / 2.0).reshape(1, act_dim),
    }
    return params


def _reference_forward(obs, params, noise):
    # Pure-JAX reference mirroring the PyTorch forward (reparameterize=True,
    # deterministic=False, return_log_pi=True).
    x = (obs - params["obs_bias"]) / (params["obs_scale"] + EPS)
    h1 = jnp.maximum(x @ params["w1"] + params["b1"], 0.0)
    h2 = jnp.maximum(h1 @ params["w2"] + params["b2"], 0.0)
    mean = h2 @ params["w_mean"] + params["b_mean"]
    log_std = jnp.clip(h2 @ params["w_logstd"] + params["b_logstd"],
                       LOG_STD_MIN, LOG_STD_MAX)
    std = jnp.exp(log_std)
    sample = mean + std * noise
    prob = jnp.tanh(sample)
    log_prob = (-0.5 * ((sample - mean) / std) ** 2
                - jnp.log(std) - 0.5 * jnp.log(2.0 * jnp.pi))
    log_prob = log_prob - jnp.log(params["act_scale"] * (1.0 - prob ** 2) + EPS)
    log_pi = jnp.sum(log_prob, axis=1, keepdims=True)
    pi = prob * params["act_scale"] + params["act_bias"]
    return pi, log_pi


if __name__ == "__main__":
    B, OBS_DIM, HIDDEN, ACT_DIM = 8, 16, (64, 64), 4

    key = jax.random.PRNGKey(0)
    k_params, k_obs, k_noise = jax.random.split(key, 3)

    act_up_lim = jnp.full((ACT_DIM,), 2.0, jnp.float32)
    act_low_lim = jnp.full((ACT_DIM,), -1.0, jnp.float32)

    params = make_params(k_params, OBS_DIM, HIDDEN, ACT_DIM, act_up_lim, act_low_lim)
    obs = jax.random.normal(k_obs, (B, OBS_DIM), jnp.float32)
    noise = jax.random.normal(k_noise, (B, ACT_DIM), jnp.float32)  # rsample noise

    pi, log_pi = stochastic_policy_forward(obs, params, noise)
    jax.block_until_ready((pi, log_pi))

    pi_ref, log_pi_ref = _reference_forward(obs, params, noise)
    assert pi.shape == (B, ACT_DIM) and log_pi.shape == (B, 1)
    assert jnp.allclose(pi, pi_ref, atol=1e-5, rtol=1e-5)
    assert jnp.allclose(log_pi, log_pi_ref, atol=1e-4, rtol=1e-4)

    print("KERNEL_OK")
</pallas_src>

<mosaic_0001>
module attributes {stable_mosaic.version = 11 : i64} {
  func.func @_policy_kernel(%arg0: i32, %arg1: memref<8x128xf32, #tpu.memory_space<vmem>>, %arg2: memref<1x128xf32, #tpu.memory_space<vmem>>, %arg3: memref<1x128xf32, #tpu.memory_space<vmem>>, %arg4: memref<128x128xf32, #tpu.memory_space<vmem>>, %arg5: memref<1x128xf32, #tpu.memory_space<vmem>>, %arg6: memref<128x128xf32, #tpu.memory_space<vmem>>, %arg7: memref<1x128xf32, #tpu.memory_space<vmem>>, %arg8: memref<128x256xf32, #tpu.memory_space<vmem>>, %arg9: memref<1x256xf32, #tpu.memory_space<vmem>>, %arg10: memref<8x128xf32, #tpu.memory_space<vmem>>, %arg11: memref<1x128xf32, #tpu.memory_space<vmem>>, %arg12: memref<1x128xf32, #tpu.memory_space<vmem>>, %arg13: memref<8x128xf32, #tpu.memory_space<vmem>>) attributes {dimension_semantics = [#tpu.dimension_semantics<parallel>], iteration_bounds = array<i64: 1>, scalar_prefetch = 0 : i64, scratch_operands = 0 : i64, tpu.core_type = #tpu.core_type<tc>, window_params = [{transform_indices = @transform_0, window_bounds = array<i64: 8, 128>}, {pipeline_mode = #tpu.pipeline_mode<synchronous>, transform_indices = @transform_1, window_bounds = array<i64: 1, 128>}, {pipeline_mode = #tpu.pipeline_mode<synchronous>, transform_indices = @transform_2, window_bounds = array<i64: 1, 128>}, {pipeline_mode = #tpu.pipeline_mode<synchronous>, transform_indices = @transform_3, window_bounds = array<i64: 128, 128>}, {pipeline_mode = #tpu.pipeline_mode<synchronous>, transform_indices = @transform_4, window_bounds = array<i64: 1, 128>}, {pipeline_mode = #tpu.pipeline_mode<synchronous>, transform_indices = @transform_5, window_bounds = array<i64: 128, 128>}, {pipeline_mode = #tpu.pipeline_mode<synchronous>, transform_indices = @transform_6, window_bounds = array<i64: 1, 128>}, {pipeline_mode = #tpu.pipeline_mode<synchronous>, transform_indices = @transform_7, window_bounds = array<i64: 128, 256>}, {pipeline_mode = #tpu.pipeline_mode<synchronous>, transform_indices = @transform_8, window_bounds = array<i64: 1, 256>}, {transform_indices = @transform_9, window_bounds = array<i64: 8, 128>}, {pipeline_mode = #tpu.pipeline_mode<synchronous>, transform_indices = @transform_10, window_bounds = array<i64: 1, 128>}, {pipeline_mode = #tpu.pipeline_mode<synchronous>, transform_indices = @transform_11, window_bounds = array<i64: 1, 128>}, {transform_indices = @transform_12, window_bounds = array<i64: 8, 128>}]} {
    %c0 = arith.constant 0 : index
    %c0_0 = arith.constant 0 : index
    %0 = vector.load %arg1[%c0, %c0_0] : memref<8x128xf32, #tpu.memory_space<vmem>>, vector<8x128xf32>
    %c0_1 = arith.constant 0 : index
    %c0_2 = arith.constant 0 : index
    %1 = vector.load %arg2[%c0_1, %c0_2] : memref<1x128xf32, #tpu.memory_space<vmem>>, vector<1x128xf32>
    %2 = vector.broadcast %1 : vector<1x128xf32> to vector<8x128xf32>
    %3 = arith.subf %0, %2 : vector<8x128xf32>
    %c0_3 = arith.constant 0 : index
    %c0_4 = arith.constant 0 : index
    %4 = vector.load %arg3[%c0_3, %c0_4] : memref<1x128xf32, #tpu.memory_space<vmem>>, vector<1x128xf32>
    %5 = vector.broadcast %4 : vector<1x128xf32> to vector<8x128xf32>
    %6 = arith.mulf %3, %5 : vector<8x128xf32>
    %c0_5 = arith.constant 0 : index
    %c0_6 = arith.constant 0 : index
    %7 = vector.load %arg4[%c0_5, %c0_6] : memref<128x128xf32, #tpu.memory_space<vmem>>, vector<128x128xf32>
    %cst = arith.constant dense<0.000000e+00> : vector<8x128xf32>
    %8 = tpu.matmul %6, %7, %cst {dimension_numbers = #tpu.dot_dimension_numbers<[1], [0], [0], [1], [0, 0, 1, 1], [], []>} : vector<8x128xf32>, vector<128x128xf32>, vector<8x128xf32> -> vector<8x128xf32>
    %c0_7 = arith.constant 0 : index
    %c0_8 = arith.constant 0 : index
    %9 = vector.load %arg5[%c0_7, %c0_8] : memref<1x128xf32, #tpu.memory_space<vmem>>, vector<1x128xf32>
    %10 = vector.broadcast %9 : vector<1x128xf32> to vector<8x128xf32>
    %11 = arith.addf %8, %10 : vector<8x128xf32>
    %cst_9 = arith.constant 0.000000e+00 : f32
    %12 = vector.broadcast %cst_9 : f32 to vector<8x128xf32>
    %13 = arith.maximumf %11, %12 : vector<8x128xf32>
    %c0_10 = arith.constant 0 : index
    %c0_11 = arith.constant 0 : index
    %14 = vector.load %arg6[%c0_10, %c0_11] : memref<128x128xf32, #tpu.memory_space<vmem>>, vector<128x128xf32>
    %cst_12 = arith.constant dense<0.000000e+00> : vector<8x128xf32>
    %15 = tpu.matmul %13, %14, %cst_12 {dimension_numbers = #tpu.dot_dimension_numbers<[1], [0], [0], [1], [0, 0, 1, 1], [], []>} : vector<8x128xf32>, vector<128x128xf32>, vector<8x128xf32> -> vector<8x128xf32>
    %c0_13 = arith.constant 0 : index
    %c0_14 = arith.constant 0 : index
    %16 = vector.load %arg7[%c0_13, %c0_14] : memref<1x128xf32, #tpu.memory_space<vmem>>, vector<1x128xf32>
    %17 = vector.broadcast %16 : vector<1x128xf32> to vector<8x128xf32>
    %18 = arith.addf %15, %17 : vector<8x128xf32>
    %cst_15 = arith.constant 0.000000e+00 : f32
    %19 = vector.broadcast %cst_15 : f32 to vector<8x128xf32>
    %20 = arith.maximumf %18, %19 : vector<8x128xf32>
    %c0_16 = arith.constant 0 : index
    %c0_17 = arith.constant 0 : index
    %21 = vector.load %arg8[%c0_16, %c0_17] : memref<128x256xf32, #tpu.memory_space<vmem>>, vector<128x256xf32>
    %cst_18 = arith.constant dense<0.000000e+00> : vector<8x256xf32>
    %22 = tpu.matmul %20, %21, %cst_18 {dimension_numbers = #tpu.dot_dimension_numbers<[1], [0], [0], [1], [0, 0, 1, 1], [], []>} : vector<8x128xf32>, vector<128x256xf32>, vector<8x256xf32> -> vector<8x256xf32>
    %c0_19 = arith.constant 0 : index
    %c0_20 = arith.constant 0 : index
    %23 = vector.load %arg9[%c0_19, %c0_20] : memref<1x256xf32, #tpu.memory_space<vmem>>, vector<1x256xf32>
    %24 = vector.broadcast %23 : vector<1x256xf32> to vector<8x256xf32>
    %25 = arith.addf %22, %24 : vector<8x256xf32>
    %26 = vector.extract_strided_slice %25 {offsets = [0, 0], sizes = [8, 128], strides = [1, 1]} : vector<8x256xf32> to vector<8x128xf32>
    %27 = vector.extract_strided_slice %25 {offsets = [0, 128], sizes = [8, 128], strides = [1, 1]} : vector<8x256xf32> to vector<8x128xf32>
    %cst_21 = arith.constant -2.000000e+01 : f32
    %cst_22 = arith.constant 2.000000e+00 : f32
    %28 = vector.broadcast %cst_21 : f32 to vector<8x128xf32>
    %29 = arith.maximumf %28, %27 : vector<8x128xf32>
    %30 = vector.broadcast %cst_22 : f32 to vector<8x128xf32>
    %31 = arith.minimumf %30, %29 : vector<8x128xf32>
    %32 = math.exp %31 : vector<8x128xf32>
    %c0_23 = arith.constant 0 : index
    %c0_24 = arith.constant 0 : index
    %33 = vector.load %arg10[%c0_23, %c0_24] : memref<8x128xf32, #tpu.memory_space<vmem>>, vector<8x128xf32>
    %34 = arith.mulf %32, %33 : vector<8x128xf32>
    %35 = arith.addf %26, %34 : vector<8x128xf32>
    %36 = math.tanh %35 : vector<8x128xf32>
    %c0_25 = arith.constant 0 : index
    %c0_26 = arith.constant 0 : index
    %37 = vector.load %arg11[%c0_25, %c0_26] : memref<1x128xf32, #tpu.memory_space<vmem>>, vector<1x128xf32>
    %cst_27 = arith.constant -5.000000e-01 : f32
    %38 = vector.broadcast %cst_27 : f32 to vector<8x128xf32>
    %39 = arith.mulf %38, %33 : vector<8x128xf32>
    %40 = arith.mulf %39, %33 : vector<8x128xf32>
    %41 = arith.subf %40, %31 : vector<8x128xf32>
    %cst_28 = arith.constant 6.28318548 : f32
    %42 = math.log %cst_28 : f32
    %cst_29 = arith.constant 5.000000e-01 : f32
    %43 = arith.mulf %cst_29, %42 : f32
    %44 = vector.broadcast %43 : f32 to vector<8x128xf32>
    %45 = arith.subf %41, %44 : vector<8x128xf32>
    %46 = arith.mulf %36, %36 : vector<8x128xf32>
    %cst_30 = arith.constant 1.000000e+00 : f32
    %47 = vector.broadcast %cst_30 : f32 to vector<8x128xf32>
    %48 = arith.subf %47, %46 : vector<8x128xf32>
    %49 = vector.broadcast %37 : vector<1x128xf32> to vector<8x128xf32>
    %50 = arith.mulf %49, %48 : vector<8x128xf32>
    %cst_31 = arith.constant 9.99999993E-9 : f32
    %51 = vector.broadcast %cst_31 : f32 to vector<8x128xf32>
    %52 = arith.addf %50, %51 : vector<8x128xf32>
    %53 = math.log %52 : vector<8x128xf32>
    %54 = arith.subf %45, %53 : vector<8x128xf32>
    %55 = tpu.iota {dimensions = array<i32: 1>} : vector<8x128xi32>
    %c4_i32 = arith.constant 4 : i32
    %56 = vector.broadcast %c4_i32 : i32 to vector<8x128xi32>
    %57 = arith.cmpi slt, %55, %56 : vector<8x128xi32>
    %cst_32 = arith.constant 0.000000e+00 : f32
    %58 = vector.broadcast %cst_32 : f32 to vector<8x128xf32>
    %59 = arith.select %57, %54, %58 : vector<8x128xi1>, vector<8x128xf32>
    %cst_33 = arith.constant dense<0.000000e+00> : vector<8xf32>
    %60 = vector.multi_reduction <add>, %59, %cst_33 [1] : vector<8x128xf32> to vector<8xf32>
    %61 = vector.shape_cast %60 : vector<8xf32> to vector<8x1xf32>
    %62 = vector.broadcast %37 : vector<1x128xf32> to vector<8x128xf32>
    %63 = arith.mulf %36, %62 : vector<8x128xf32>
    %c0_34 = arith.constant 0 : index
    %c0_35 = arith.constant 0 : index
    %64 = vector.load %arg12[%c0_34, %c0_35] : memref<1x128xf32, #tpu.memory_space<vmem>>, vector<1x128xf32>
    %65 = vector.broadcast %64 : vector<1x128xf32> to vector<8x128xf32>
    %66 = arith.addf %63, %65 : vector<8x128xf32>
    %c4_i32_36 = arith.constant 4 : i32
    %67 = vector.broadcast %c4_i32_36 : i32 to vector<8x128xi32>
    %68 = arith.cmpi eq, %55, %67 : vector<8x128xi32>
    %69 = vector.shape_cast %61 : vector<8x1xf32> to vector<8x1xf32>
    %70 = vector.broadcast %69 : vector<8x1xf32> to vector<8x128xf32>
    %71 = arith.select %68, %70, %66 : vector<8x128xi1>, vector<8x128xf32>
    %c0_37 = arith.constant 0 : index
    %c0_38 = arith.constant 0 : index
    %72 = vector.load %arg13[%c0_37, %c0_38] : memref<8x128xf32, #tpu.memory_space<vmem>>, vector<8x128xf32>
    tpu.vector_store %arg13[%c0_37, %c0_38], %71 {strides = array<i32>} : memref<8x128xf32, #tpu.memory_space<vmem>>, vector<8x128xf32>,
    return
  }
  func.func @transform_0(%arg0: i32) -> (i32, i32) {
    %c0_i32 = arith.constant 0 : i32
    %c0_i32_0 = arith.constant 0 : i32
    return %arg0, %c0_i32 : i32, i32
  }
  func.func @transform_1(%arg0: i32) -> (i32, i32) {
    %c0_i32 = arith.constant 0 : i32
    %c0_i32_0 = arith.constant 0 : i32
    %c0_i32_1 = arith.constant 0 : i32
    return %c0_i32, %c0_i32_0 : i32, i32
  }
  func.func @transform_2(%arg0: i32) -> (i32, i32) {
    %c0_i32 = arith.constant 0 : i32
    %c0_i32_0 = arith.constant 0 : i32
    %c0_i32_1 = arith.constant 0 : i32
    return %c0_i32, %c0_i32_0 : i32, i32
  }
  func.func @transform_3(%arg0: i32) -> (i32, i32) {
    %c0_i32 = arith.constant 0 : i32
    %c0_i32_0 = arith.constant 0 : i32
    %c0_i32_1 = arith.constant 0 : i32
    return %c0_i32, %c0_i32_0 : i32, i32
  }
  func.func @transform_4(%arg0: i32) -> (i32, i32) {
    %c0_i32 = arith.constant 0 : i32
    %c0_i32_0 = arith.constant 0 : i32
    %c0_i32_1 = arith.constant 0 : i32
    return %c0_i32, %c0_i32_0 : i32, i32
  }
  func.func @transform_5(%arg0: i32) -> (i32, i32) {
    %c0_i32 = arith.constant 0 : i32
    %c0_i32_0 = arith.constant 0 : i32
    %c0_i32_1 = arith.constant 0 : i32
    return %c0_i32, %c0_i32_0 : i32, i32
  }
  func.func @transform_6(%arg0: i32) -> (i32, i32) {
    %c0_i32 = arith.constant 0 : i32
    %c0_i32_0 = arith.constant 0 : i32
    %c0_i32_1 = arith.constant 0 : i32
    return %c0_i32, %c0_i32_0 : i32, i32
  }
  func.func @transform_7(%arg0: i32) -> (i32, i32) {
    %c0_i32 = arith.constant 0 : i32
    %c0_i32_0 = arith.constant 0 : i32
    %c0_i32_1 = arith.constant 0 : i32
    return %c0_i32, %c0_i32_0 : i32, i32
  }
  func.func @transform_8(%arg0: i32) -> (i32, i32) {
    %c0_i32 = arith.constant 0 : i32
    %c0_i32_0 = arith.constant 0 : i32
    %c0_i32_1 = arith.constant 0 : i32
    return %c0_i32, %c0_i32_0 : i32, i32
  }
  func.func @transform_9(%arg0: i32) -> (i32, i32) {
    %c0_i32 = arith.constant 0 : i32
    %c0_i32_0 = arith.constant 0 : i32
    return %arg0, %c0_i32 : i32, i32
  }
  func.func @transform_10(%arg0: i32) -> (i32, i32) {
    %c0_i32 = arith.constant 0 : i32
    %c0_i32_0 = arith.constant 0 : i32
    %c0_i32_1 = arith.constant 0 : i32
    return %c0_i32, %c0_i32_0 : i32, i32
  }
  func.func @transform_11(%arg0: i32) -> (i32, i32) {
    %c0_i32 = arith.constant 0 : i32
    %c0_i32_0 = arith.constant 0 : i32
    %c0_i32_1 = arith.constant 0 : i32
    return %c0_i32, %c0_i32_0 : i32, i32
  }
  func.func @transform_12(%arg0: i32) -> (i32, i32) {
    %c0_i32 = arith.constant 0 : i32
    %c0_i32_0 = arith.constant 0 : i32
    return %arg0, %c0_i32 : i32, i32
  }
}

</mosaic_0001>

<bundles_post_ra>
// kernel: tpu_custom_call.1
= control target key start
LH: loop header
LB: loop body
LE: loop exit
PB: predicated region body
PF: predicated region fallthrough
CT: control target
= control target key end

     0   :  { %17 = vsyncpa [#allocation3], 0  ;;  %s895_s0 = inlined_call_operand.hbm [shape: f32[8,128], index: 0, kind: input, shape index: {}]   ;;  %s896_s1 = inlined_call_operand.vmem [shape: f32[1,128], index: 1, kind: input, shape index: {}]   ;;  %s897_s2 = inlined_call_operand.hbm [shape: f32[1,128], index: 2, kind: input, shape index: {}]   ;;  %s898_s3 = inlined_call_operand.hbm [shape: f32[128,128], index: 3, kind: input, shape index: {}]   ;;  %s899_s4 = inlined_call_operand.vmem [shape: f32[1,128], index: 4, kind: input, shape index: {}]   ;;  %s900_s5 = inlined_call_operand.hbm [shape: f32[128,128], index: 5, kind: input, shape index: {}]   ;;  %s901_s6 = inlined_call_operand.vmem [shape: f32[1,128], index: 6, kind: input, shape index: {}]   ;;  %s902_s7 = inlined_call_operand.hbm [shape: f32[128,256], index: 7, kind: input, shape index: {}]   ;;  %s903_s8 = inlined_call_operand.vmem [shape: f32[1,256], index: 8, kind: input, shape index: {}]   ;;  %s904_s9 = inlined_call_operand.vmem [shape: f32[8,128], index: 9, kind: input, shape index: {}]   ;;  %s905_s10 = inlined_call_operand.vmem [shape: f32[1,128], index: 10, kind: input, shape index: {}]   ;;  %s906_s11 = inlined_call_operand.vmem [shape: f32[1,128], index: 11, kind: input, shape index: {}]   ;;  %s907_s12 = inlined_call_operand.hbm [shape: f32[8,128], index: 12, kind: output, shape index: {}]  }
   0x1   :  { %18 = vsyncpa [#allocation6], 0 }
   0x2   :  { %19 = vsyncpa [#allocation9], 0 }
   0x3   :  { %20 = vsyncpa [#allocation4], 0  ;;  %s744_s21 = smov [#allocation5]  }
   0x4   :  { %s39_s22 = sshll.u32 %s744_s21, 4  ;;  %s40_s22 = int_to_ptr.vmem [resolvable:$true] %s39_s22 }
   0x5   :  { %s624_s23 = scalar_lea.vmem %s40_s22, 16  ;;  %s628_s24 = scalar_lea.vmem %s40_s22, 32 }
   0x6   :  { %p625_p0 = scmp.ne.s32.totalorder %s40_s22, %s624_s23  ;;  %p629_p1 = scmp.lt.s32.totalorder %s40_s22, %s40_s22 }
   0x7   :  { %p630_p2 = scmp.lt.s32.totalorder %s628_s24, %s624_s23 }
   0x9   :  { %p631_p3 = por %p630_p2, %p629_p1 }
   0xb   :  { %p632_p4 = pnand %p631_p3, %p625_p0 }
   0xd   :  { %635 = shalt.err (!%p632_p4)
}
   0xe   :  { %42 = dma.hbm_to_vmem [thread:$0]  %s897_s2, 16, %s40_s22, [#allocation6]  }
   0xf   :  { %s745_s27 = smov [#allocation8]   ;;  %s746_s29 = smov [#allocation2]  }
  0x10   :  { %s62_s28 = sshll.u32 %s745_s27, 4  ;;  %s27_s30 = sshll.u32 %s746_s29, 4  ;;  %s63_s28 = int_to_ptr.vmem [resolvable:$true] %s62_s28  ;;  %s28_s30 = int_to_ptr.vmem [resolvable:$true] %s27_s30 }
  0x11   :  { %s644_s13 = scalar_lea.vmem %s63_s28, 2048  ;;  %p649_p6 = scmp.lt.s32.totalorder %s63_s28, %s63_s28 }
  0x12   :  { %p645_p5 = scmp.ne.s32.totalorder %s63_s28, %s644_s13  ;;  %p650_p7 = scmp.lt.s32.totalorder %s644_s13, %s644_s13 }
  0x14   :  { %p651_p8 = por %p650_p7, %p649_p6 }
  0x16   :  { %p652_p9 = pnand %p651_p8, %p645_p5 }
  0x18   :  { %655 = shalt.err (!%p652_p9)
}
  0x19   :  { %s747_s14 = smov 128   ;;  %s748_s15 = smov 8  }
  0x1a   :  { %68 = dma.hbm_to_vmem [thread:$0]  %s900_s5, 2048, %s63_s28, [#allocation9], %s747_s14, %s747_s14, %s748_s15  }
  0x1b   :  { %s664_s2 = scalar_lea.vmem %s28_s30, 128  ;;  %p669_p11 = scmp.lt.s32.totalorder %s28_s30, %s28_s30 }
  0x1c   :  { %p665_p10 = scmp.ne.s32.totalorder %s28_s30, %s664_s2  ;;  %p670_p12 = scmp.lt.s32.totalorder %s664_s2, %s664_s2 }
  0x1e   :  { %p671_p13 = por %p670_p12, %p669_p11 }
  0x20   :  { %p672_p0 = pnand %p671_p13, %p665_p10 }
  0x22   :  { %675 = shalt.err (!%p672_p0)
}
  0x23   :  { %30 = dma.hbm_to_vmem [thread:$0]  %s895_s0, 128, %s28_s30, [#allocation3]  }
  0x24   :  { %s749_s20 = smov [#allocation7]   ;;  %s750_s22 = smov [#allocation10]  }
  0x25   :  { %s48_s21 = sshll.u32 %s749_s20, 4  ;;  %s76_s23 = sshll.u32 %s750_s22, 4  ;;  %s49_s21 = int_to_ptr.vmem [resolvable:$true] %s48_s21  ;;  %s77_s23 = int_to_ptr.vmem [resolvable:$true] %s76_s23 }
  0x26   :  { %s684_s24 = scalar_lea.vmem %s49_s21, 2048  ;;  %p689_p2 = scmp.lt.s32.totalorder %s49_s21, %s49_s21 }
  0x27   :  { %p685_p1 = scmp.ne.s32.totalorder %s49_s21, %s684_s24  ;;  %p690_p3 = scmp.lt.s32.totalorder %s684_s24, %s684_s24 }
  0x29   :  { %p691_p4 = por %p690_p3, %p689_p2 }
  0x2b   :  { %p692_p5 = pnand %p691_p4, %p685_p1 }
  0x2d   :  { %695 = shalt.err (!%p692_p5)
}
  0x2e   :  { %54 = dma.hbm_to_vmem [thread:$0]  %s898_s3, 2048, %s49_s21, [#allocation6], %s747_s14, %s747_s14, %s748_s15  }
  0x2f   :  { %s704_s26 = scalar_lea.vmem %s77_s23, 4096  ;;  %p709_p7 = scmp.lt.s32.totalorder %s77_s23, %s77_s23 }
  0x30   :  { %p705_p6 = scmp.ne.s32.totalorder %s77_s23, %s704_s26  ;;  %p710_p8 = scmp.lt.s32.totalorder %s704_s26, %s704_s26 }
  0x32   :  { %p711_p9 = por %p710_p8, %p709_p7 }
  0x34   :  { %p712_p10 = pnand %p711_p9, %p705_p6 }
  0x36   :  { %715 = shalt.err (!%p712_p10)
}
  0x37   :  { %s751_s0 = smov 256   ;;  %s752_s27 = smov 16  }
  0x38   :  { %82 = dma.hbm_to_vmem [thread:$0]  %s902_s7, 4096, %s77_s23, [#allocation9], %s751_s0, %s751_s0, %s752_s27  }
  0x39   :  { %736 = dma.done.wait [#allocation3], 128  }
  0x3a   :  { %737 = vsyncadd [#allocation3], 4294967168 }
  0x3b   :  { %738 = dma.done.wait [#allocation6], 2064  }
  0x3c   :  { %739 = vsyncadd [#allocation6], 4294965232 }
  0x3d   :  { %740 = dma.done.wait [#allocation9], 6144  }
  0x3e   :  { %741 = vsyncadd [#allocation9], 4294961152  ;;  %v753_v0 = vmov 0.0   ;;  %vm754_vm0 = vmmov 0   ;;  %v138_v1 = vld [vmem:[#allocation7 + $0x78] sm:$0xff]  ;;  %v137_v2 = vld [vmem:[#allocation7 + $0x70] sm:$0xff] }
  0x3f   :  { %528 = vmatprep.subr.mxu0 %v753_v0  ;;  %560 = vmatprep.mubr.msk.f32.mxu0 %vm754_vm0, %v753_v0  ;;  %v136_v3 = vld [vmem:[#allocation7 + $0x68] sm:$0xff]  ;;  %v135_v4 = vld [vmem:[#allocation7 + $0x60] sm:$0xff]  ;;  %v134_v5 = vld [vmem:[#allocation7 + $0x58] sm:$0xff]  ;;  %s755_s2 = smov [#allocation11]  }
  0x40   :  { %563 = vmatprep.subr.mxu1 %v753_v0  ;;  %595 = vmatprep.mubr.msk.f32.mxu1 %vm754_vm0, %v753_v0  ;;  %v232_v6 = vld [vmem:[#allocation8 + $0x78] sm:$0xff]  ;;  %v231_v7 = vld [vmem:[#allocation8 + $0x70] sm:$0xff]  ;;  %v230_v9 = vld [vmem:[#allocation8 + $0x68] sm:$0xff]  ;;  %s476_s18 = sshll.u32 %s755_s2, 4  ;;  %s477_s18 = int_to_ptr.vmem [resolvable:$true] %s476_s18 }
  0x41   :  { %529 = vmatpush3.msra.mxu0 %v138_v1  ;;  %564 = vmatpush3.msra.mxu1 %v232_v6  ;;  %v133_v8 = vld [vmem:[#allocation7 + $0x50] sm:$0xff]  ;;  %v132_v10 = vld [vmem:[#allocation7 + $0x48] sm:$0xff]  ;;  %v229_v11 = vld [vmem:[#allocation8 + $0x60] sm:$0xff]  ;;  %s716_s19 = scalar_lea.vmem %s477_s18, 128  ;;  %p721_p12 = scmp.lt.s32.totalorder %s477_s18, %s477_s18 }
  0x42   :  { %530 = vmatprep.subr.mxu0 %v753_v0  ;;  %565 = vmatprep.subr.mxu1 %v753_v0  ;;  %v131_v12 = vld [vmem:[#allocation7 + $0x40] sm:$0xff]  ;;  %v228_v13 = vld [vmem:[#allocation8 + $0x58] sm:$0xff]  ;;  %v227_v15 = vld [vmem:[#allocation8 + $0x50] sm:$0xff]  ;;  %p717_p11 = scmp.ne.s32.totalorder %s477_s18, %s716_s19  ;;  %p722_p13 = scmp.lt.s32.totalorder %s716_s19, %s716_s19 }
  0x43   :  { %531 = vmatpush3.msra.mxu0 %v137_v2  ;;  %566 = vmatpush3.msra.mxu1 %v231_v7  ;;  %v130_v14 = vld [vmem:[#allocation7 + $0x38] sm:$0xff]  ;;  %v129_v16 = vld [vmem:[#allocation7 + $0x30] sm:$0xff]  ;;  %v226_v17 = vld [vmem:[#allocation8 + $0x48] sm:$0xff] }
  0x44   :  { %532 = vmatprep.subr.mxu0 %v753_v0  ;;  %567 = vmatprep.subr.mxu1 %v753_v0  ;;  %v128_v18 = vld [vmem:[#allocation7 + $0x28] sm:$0xff]  ;;  %v225_v19 = vld [vmem:[#allocation8 + $0x40] sm:$0xff]  ;;  %v224_v21 = vld [vmem:[#allocation8 + $0x38] sm:$0xff]  ;;  %p723_p0 = por %p722_p13, %p721_p12 }
  0x45   :  { %533 = vmatpush3.msra.mxu0 %v136_v3  ;;  %568 = vmatpush3.msra.mxu1 %v230_v9  ;;  %v127_v20 = vld [vmem:[#allocation7 + $0x20] sm:$0xff]  ;;  %v106_v22 = vld [vmem:[#allocation2] sm:$0xff]  ;;  %v222_v28 = vld [vmem:[#allocation8 + $0x28] sm:$0xff] }
  0x46   :  { %534 = vmatprep.subr.mxu0 %v753_v0  ;;  %569 = vmatprep.subr.mxu1 %v753_v0  ;;  %v487_v23 = vld [vmem:[%s896_s1] ss:$0 sm:$0xff]  ;;  %v126_v24 = vld [vmem:[#allocation7 + $0x18] sm:$0xff]  ;;  %v124_v30 = vld [vmem:[#allocation7 + $0x8] sm:$0xff]  ;;  %p724_p1 = pnand %p723_p0, %p717_p11 }
  0x47   :  { %535 = vmatpush3.msra.mxu0 %v135_v4  ;;  %570 = vmatpush3.msra.mxu1 %v229_v11  ;;  %v223_v25 = vld [vmem:[#allocation8 + $0x30] sm:$0xff]  ;;  %v114_v27 = vsub.f32 %v106_v22, %v487_v23  ;;  %v488_v29 = vld [vmem:[#allocation5] ss:$0 sm:$0xff]  ;;  %v221_v31 = vld [vmem:[#allocation8 + $0x20] sm:$0xff] }
  0x48   :  { %536 = vmatprep.subr.mxu0 %v753_v0  ;;  %571 = vmatprep.subr.mxu1 %v753_v0  ;;  %v125_v26 = vld [vmem:[#allocation7 + $0x10] sm:$0xff]  ;;  %v123_v32 = vld [vmem:[#allocation7] sm:$0xff]  ;;  %v220_v34 = vld [vmem:[#allocation8 + $0x18] sm:$0xff] }
  0x49   :  { %537 = vmatpush3.msra.mxu0 %v134_v5  ;;  %572 = vmatpush3.msra.mxu1 %v228_v13  ;;  %v122_v33 = vmul.f32 %v488_v29, %v114_v27  ;;  %v219_v35 = vld [vmem:[#allocation8 + $0x10] sm:$0xff]  ;;  %v218_v36 = vld [vmem:[#allocation8 + $0x8] sm:$0xff]  ;;  %v217_v37 = vld [vmem:[#allocation8] sm:$0xff] }
  0x4a   :  { %538 = vmatprep.subr.mxu0 %v753_v0  ;;  %573 = vmatprep.subr.mxu1 %v753_v0  ;;  %v342_v38 = vld [vmem:[#allocation10 + $0xf8] sm:$0xff]  ;;  %v341_v39 = vld [vmem:[#allocation10 + $0xf0] sm:$0xff]  ;;  %v340_v40 = vld [vmem:[#allocation10 + $0xe8] sm:$0xff] }
  0x4b   :  { %539 = vmatpush3.msra.mxu0 %v133_v8  ;;  %574 = vmatpush3.msra.mxu1 %v227_v15  ;;  %v339_v41 = vld [vmem:[#allocation10 + $0xe0] sm:$0xff]  ;;  %v338_v42 = vld [vmem:[#allocation10 + $0xd8] sm:$0xff]  ;;  %v337_v43 = vld [vmem:[#allocation10 + $0xd0] sm:$0xff] }
  0x4c   :  { %540 = vmatprep.subr.mxu0 %v753_v0  ;;  %575 = vmatprep.subr.mxu1 %v753_v0  ;;  %v336_v44 = vld [vmem:[#allocation10 + $0xc8] sm:$0xff]  ;;  %v335_v45 = vld [vmem:[#allocation10 + $0xc0] sm:$0xff]  ;;  %v334_v46 = vld [vmem:[#allocation10 + $0xb8] sm:$0xff] }
  0x4d   :  { %541 = vmatpush3.msra.mxu0 %v132_v10  ;;  %576 = vmatpush3.msra.mxu1 %v226_v17  ;;  %v333_v47 = vld [vmem:[#allocation10 + $0xb0] sm:$0xff]  ;;  %v332_v48 = vld [vmem:[#allocation10 + $0xa8] sm:$0xff]  ;;  %v331_v49 = vld [vmem:[#allocation10 + $0xa0] sm:$0xff] }
  0x4e   :  { %542 = vmatprep.subr.mxu0 %v753_v0  ;;  %577 = vmatprep.subr.mxu1 %v753_v0  ;;  %v330_v50 = vld [vmem:[#allocation10 + $0x98] sm:$0xff]  ;;  %v329_v51 = vld [vmem:[#allocation10 + $0x90] sm:$0xff]  ;;  %v328_v52 = vld [vmem:[#allocation10 + $0x88] sm:$0xff] }
  0x4f   :  { %543 = vmatpush3.msra.mxu0 %v131_v12  ;;  %578 = vmatpush3.msra.mxu1 %v225_v19  ;;  %v327_v53 = vld [vmem:[#allocation10 + $0x80] sm:$0xff]  ;;  %v326_v54 = vld [vmem:[#allocation10 + $0x78] sm:$0xff]  ;;  %v325_v55 = vld [vmem:[#allocation10 + $0x70] sm:$0xff] }
  0x50   :  { %544 = vmatprep.subr.mxu0 %v753_v0  ;;  %579 = vmatprep.subr.mxu1 %v753_v0  ;;  %v324_v56 = vld [vmem:[#allocation10 + $0x68] sm:$0xff]  ;;  %v323_v57 = vld [vmem:[#allocation10 + $0x60] sm:$0xff]  ;;  %v322_v58 = vld [vmem:[#allocation10 + $0x58] sm:$0xff] }
  0x51   :  { %545 = vmatpush3.msra.mxu0 %v130_v14  ;;  %580 = vmatpush3.msra.mxu1 %v224_v21  ;;  %v321_v59 = vld [vmem:[#allocation10 + $0x50] sm:$0xff]  ;;  %v320_v60 = vld [vmem:[#allocation10 + $0x48] sm:$0xff]  ;;  %v319_v61 = vld [vmem:[#allocation10 + $0x40] sm:$0xff] }
  0x52   :  { %546 = vmatprep.subr.mxu0 %v753_v0  ;;  %581 = vmatprep.subr.mxu1 %v753_v0  ;;  %v318_v62 = vld [vmem:[#allocation10 + $0x38] sm:$0xff]  ;;  %v317_v63 = vld [vmem:[#allocation10 + $0x30] sm:$0xff]  ;;  %v315_v6 = vld [vmem:[#allocation10 + $0x20] sm:$0xff] }
  0x53   :  { %547 = vmatpush3.msra.mxu0 %v129_v16  ;;  %582 = vmatpush3.msra.mxu1 %v223_v25  ;;  %v489_v1 = vld [vmem:[%s899_s4] ss:$0 sm:$0xff]  ;;  %v314_v7 = vld [vmem:[#allocation10 + $0x18] sm:$0xff]  ;;  %v312_v9 = vld [vmem:[#allocation10 + $0x8] sm:$0xff]  ;;  %v345_v16 = vlaneseq }
  0x54   :  { %548 = vmatprep.subr.mxu0 %v753_v0  ;;  %583 = vmatprep.subr.mxu1 %v753_v0  ;;  %v313_v8 = vld [vmem:[#allocation10 + $0x10] sm:$0xff]  ;;  %v311_v10 = vld [vmem:[#allocation10] sm:$0xff] }
  0x55   :  { %549 = vmatpush3.msra.mxu0 %v128_v18  ;;  %584 = vmatpush3.msra.mxu1 %v222_v28  ;;  %v490_v11 = vld [vmem:[%s901_s6] ss:$0 sm:$0xff]  ;;  %v346_v17 = vshrl.u32 %v345_v16, 7 }
  0x56   :  { %550 = vmatprep.subr.mxu0 %v753_v0  ;;  %585 = vmatprep.subr.mxu1 %v753_v0  ;;  %v343_v19 = vld [vmem:[%s903_s8] sm:$0x3] }
  0x57   :  { %551 = vmatpush3.msra.mxu0 %v127_v20  ;;  %586 = vmatpush3.msra.mxu1 %v221_v31  ;;  %v351_v18 = vsub.s32 1, %v346_v17  ;;  %v347_v27 = vsub.s32 0, %v346_v17 }
  0x58   :  { %552 = vmatprep.subr.mxu0 %v753_v0  ;;  %587 = vmatprep.subr.mxu1 %v753_v0 }
  0x59   :  { %553 = vmatpush3.msra.mxu0 %v126_v24  ;;  %588 = vmatpush3.msra.mxu1 %v220_v34  ;;  %v352_v20 = vrot.slane %v343_v19, %v351_v18  ;;  %v348_v28 = vrot.slane %v343_v19, %v347_v27  ;;  %v492_v34 = vld [vmem:[%s905_s10] ss:$0 sm:$0xff] }
  0x5a   :  { %554 = vmatprep.subr.mxu0 %v753_v0  ;;  %589 = vmatprep.subr.mxu1 %v753_v0 }
  0x5b   :  { %555 = vmatpush3.msra.mxu0 %v125_v26  ;;  %590 = vmatpush3.msra.mxu1 %v219_v35 }
  0x5c   :  { %556 = vmatprep.subr.mxu0 %v753_v0  ;;  %591 = vmatprep.subr.mxu1 %v753_v0 }
  0x5d   :  { %557 = vmatpush3.msra.mxu0 %v124_v30  ;;  %592 = vmatpush3.msra.mxu1 %v218_v36  ;;  %v430_v30 = vld [vmem:[%s904_s9] sm:$0xff] }
  0x5e   :  { %558 = vmatprep.subr.mxu0 %v753_v0  ;;  %593 = vmatprep.subr.mxu1 %v753_v0 }
  0x5f   :  { %559 = vmatpush3.msra.mxu0 %v123_v32  ;;  %594 = vmatpush3.msra.mxu1 %v217_v37 }
  0x60   :  { %561 = vmatmul.mubr.f32.vlgmr.msra.gmra.mxu0 %v122_v33  ;;  %355 = vmatprep.subr.mxu0 %v342_v38 }
  0x61   :  { %419 = vmatprep.mubr.f32.mxu0 %v753_v0  ;;  %356 = vmatpush1.msra.mxu0 %v341_v39  ;;  %v316_v0 = vld [vmem:[#allocation10 + $0x28] sm:$0xff] }
  0x62   :  { %357 = vmatprep.subr.mxu0 %v340_v40 }
  0x63   :  { %358 = vmatpush1.msra.mxu0 %v339_v41  ;;  %v435_v41 = vmul.f32 -0.5, %v430_v30 }
  0x64   :  { %359 = vmatprep.subr.mxu0 %v338_v42 }
  0x65   :  { %360 = vmatpush1.msra.mxu0 %v337_v43  ;;  %v436_v42 = vmul.f32 %v435_v41, %v430_v30 }
  0x66   :  { %361 = vmatprep.subr.mxu0 %v336_v44  ;;  %v453_v44 = vand.u32 127, %v345_v16 }
  0x67   :  { %362 = vmatpush1.msra.mxu0 %v335_v45 }
  0x68   :  { %363 = vmatprep.subr.mxu0 %v334_v46  ;;  %vm454_vm1 = vcmp.lt.s32.totalorder %v453_v44, 4  ;;  %vm467_vm2 = vcmp.eq.s32.totalorder %v453_v44, 4 }
  0x69   :  { %364 = vmatpush1.msra.mxu0 %v333_v47 }
  0x6a   :  { %365 = vmatprep.subr.mxu0 %v332_v48 }
  0x6b   :  { %366 = vmatpush1.msra.mxu0 %v331_v49 }
  0x6c   :  { %367 = vmatprep.subr.mxu0 %v330_v50  ;;  %v493_v50 = vld [vmem:[%s906_s11] ss:$0 sm:$0xff] }
  0x6d   :  { %368 = vmatpush1.msra.mxu0 %v329_v51 }
  0x6e   :  { %369 = vmatprep.subr.mxu0 %v328_v52 }
  0x6f   :  { %370 = vmatpush1.msra.mxu0 %v327_v53 }
  0x70   :  { %371 = vmatprep.subr.mxu0 %v326_v54 }
  0x71   :  { %372 = vmatpush1.msra.mxu0 %v325_v55 }
  0x72   :  { %373 = vmatprep.subr.mxu0 %v324_v56 }
  0x73   :  { %374 = vmatpush1.msra.mxu0 %v323_v57 }
  0x74   :  { %375 = vmatprep.subr.mxu0 %v322_v58 }
  0x75   :  { %376 = vmatpush1.msra.mxu0 %v321_v59 }
  0x76   :  { %377 = vmatprep.subr.mxu0 %v320_v60 }
  0x77   :  { %378 = vmatpush1.msra.mxu0 %v319_v61 }
  0x78   :  { %379 = vmatprep.subr.mxu0 %v318_v62 }
  0x79   :  { %380 = vmatpush1.msra.mxu0 %v317_v63 }
  0x7a   :  { %381 = vmatprep.subr.mxu0 %v316_v0 }
  0x7b   :  { %382 = vmatpush1.msra.mxu0 %v315_v6 }
  0x7c   :  { %383 = vmatprep.subr.mxu0 %v314_v7 }
  0x7d   :  { %384 = vmatpush1.msra.mxu0 %v313_v8 }
  0x7e   :  { %385 = vmatprep.subr.mxu0 %v312_v9 }
  0x7f   :  { %386 = vmatpush1.msra.mxu0 %v311_v10 }
 0x120   :  { %v212_v2 = vpop.f32.mrf.mxu0 }
 0x121   :  { %v213_v3 = vadd.f32 %v489_v1, %v212_v2 }
 0x122   :  { %v562_v4 = vpop.f32.mrf.mxu0 }
 0x123   :  { %v216_v5 = vmax.f32 %v213_v3, 0.0 }
 0x125   :  { %596 = vmatmul.mubr.f32.vlgmr.msra.gmra.mxu1 %v216_v5 }
 0x1e5   :  { %v306_v12 = vpop.f32.mrf.mxu1 }
 0x1e6   :  { %v307_v13 = vadd.f32 %v490_v11, %v306_v12 }
 0x1e7   :  { %v597_v14 = vpop.f32.mrf.mxu1 }
 0x1e8   :  { %v310_v15 = vmax.f32 %v307_v13, 0.0 }
 0x1ea   :  { %420 = vmatmul.mubr.f32.vlgmr.msra.gmra.mxu0 %v310_v15 }
 0x2aa   :  { %v421_v21 = vpop.f32.mrf.mxu0 }
 0x2ab   :  { %v422_v31 = vadd.f32 %v421_v21, %v348_v28 }
 0x2ac   :  { %v423_v22 = vpop.f32.mrf.mxu0 }
 0x2ad   :  { %v424_v23 = vadd.f32 %v423_v22, %v352_v20 }
 0x2af   :  { %v426_v24 = vmax.f32 %v424_v23, -20.0 }
 0x2b1   :  { %v427_v25 = vmin.f32 %v426_v24, 2.0 }
 0x2b3   :  { %v428_v26 = vmul.f32 1.442695, %v427_v25  ;;  %v437_v43 = vsub.f32 %v436_v42, %v427_v25 }
 0x2b5   :  { %610 = vpow2.f32 %v428_v26  ;;  %v491_v46 = vadd.f32 -0.9189385, %v437_v43 }
 0x2c2   :  { %v611_v29 = vpop.eup %610 }
 0x2c3   :  { %v431_v32 = vmul.f32 %v611_v29, %v430_v30 }
 0x2c5   :  { %v432_v33 = vadd.f32 %v431_v32, %v422_v31 }
 0x2c7   :  { %612 = vtanh.f32 %v432_v33 }
 0x2d4   :  { %v613_v35 = vpop.eup %612 }
 0x2d5   :  { %v439_v36 = vmul.f32 %v613_v35, %v613_v35  ;;  %v458_v37 = vmul.f32 %v613_v35, %v492_v34 }
 0x2d7   :  { %v440_v38 = vsub.f32 1.0, %v439_v36  ;;  %v466_v51 = vadd.f32 %v493_v50, %v458_v37 }
 0x2d9   :  { %v447_v39 = vmul.f32 %v492_v34, %v440_v38 }
 0x2db   :  { %v448_v40 = vadd.f32 1e-08, %v447_v39 }
 0x2dd   :  { %614 = vlog2.f32 %v448_v40 }
 0x2ea   :  { %v615_v45 = vpop.eup %614 }
 0x2eb   :  { %v450_v47 = vmul.f32 0.6931472, %v615_v45 }
 0x2ed   :  { %v451_v48 = vsub.f32 %v491_v46, %v450_v47 }
 0x2ef   :  { %v455_v49 = vsel %vm454_vm1, %v451_v48, 0.0 }
 0x2f0   :  { %456 = vadd.xlane.f32.xlu0 %v455_v49 }
 0x379   :  { %v457_v52 = vpop.xlane.xlu0 %456 }
 0x37a   :  { %v468_v53 = vsel %vm467_vm2, %v457_v52, %v466_v51 }
 0x37b   :  { %469 = vst [vmem:[#allocation11] sm:$0xff] %v468_v53 }
 0x37c   :  { %727 = shalt.err (!%p724_p1)
}
 0x37d   :  { %479 = dma.vmem_to_hbm [thread:$0]  %s477_s18, 128, %s907_s12, [#allocation4]  }
 0x37e   :  { %742 = dma.done.wait [#allocation4], 128  }
 0x37f   :  { %743 = vsyncadd [#allocation4], 4294967168 }
 0x380   :  { %483 = vsyncpa [#allocation3], 1 }
 0x381   :  { %484 = vsyncpa [#allocation6], 1 }
 0x382   :  { %485 = vsyncpa [#allocation9], 1 }
 0x383   :  { %486 = vsyncpa [#allocation4], 1 }

</bundles_post_ra>
